<compile_context>
chip_gen: v7x
topology: tpu7x:2x2x1
jax: 0.10.0
libtpu: 0.0.40
codegen_flags: <defaults>
</compile_context>

<pallas_src>
import jax
import jax.numpy as jnp
from jax.experimental import pallas as pl
from jax.experimental.pallas import tpu as pltpu

# Problem sizes implied by the module (InvertedDoublePendulum obs + discretized actions)
STATES_NUM = 11
ACTIONS_NUM = 9
HIDDEN = (20, 30, 50)

LANE = 128                       # TPU lane width; all layer outputs padded to this
SUBLANE = 8                      # batch-tile granularity
MAX_TILE_B = 2048                # per-grid-step batch tile (a few MiB VMEM at most)
SMALL_BATCH_XLA_FALLBACK = 64    # below this, plain XLA beats kernel fixed cost


def _cdiv(a, b):
    return (a + b - 1) // b


def _round_up(n, m):
    return ((n + m - 1) // m) * m


def _detect_num_tensorcores():
    # v7x has 2 TensorCores per chip; a "parallel" grid axis needs >=2 steps to
    # use both.  v5e/v6e are single-TC, so 1 grid step is optimal there.
    try:
        dev = jax.devices()[0]
        if dev.platform == "tpu":
            kind = (dev.device_kind or "").lower()
            if "v7" in kind or "tpu7" in kind:
                return 2
    except Exception:
        pass
    return 1


_NUM_TENSORCORES = _detect_num_tensorcores()


def mlp_kernel(x_ref, w1_ref, w_ref, b_ref, o_ref):
    # Four chained MXU matmuls (f32 accumulation), ReLU on the VPU.  All layer
    # widths are lane-padded to 128, so every intermediate is a full-lane vreg
    # and the output store is an unmasked vst.
    cdt = w1_ref.dtype                       # MXU operand dtype (f32 or bf16)
    h = jnp.dot(x_ref[...].astype(cdt), w1_ref[...],
                preferred_element_type=jnp.float32) + b_ref[0]
    h = jnp.maximum(h, 0.0)
    h = jnp.dot(h.astype(cdt), w_ref[0],
                preferred_element_type=jnp.float32) + b_ref[1]
    h = jnp.maximum(h, 0.0)
    h = jnp.dot(h.astype(cdt), w_ref[1],
                preferred_element_type=jnp.float32) + b_ref[2]
    h = jnp.maximum(h, 0.0)
    o_ref[...] = (jnp.dot(h.astype(cdt), w_ref[2],
                          preferred_element_type=jnp.float32) + b_ref[3])


def prepare_params(params, dtype=jnp.float32):
    """One-time parameter layout (call once, reuse across forward passes).

    Returns:
      w1_p    : (STATES_NUM, 128)  fc1 weight, stored (in, out), zero-padded lanes
      w_stack : (3, 128, 128)      fc2/fc3/out weights, zero-padded
      b_stack : (4, 1, 128)        all biases (f32), zero-padded lanes

    Weights are stored (in, out) = transpose of PyTorch nn.Linear's (out, in).
    dtype=jnp.bfloat16 enables the fast MXU operand path on v6e/v7x (validate
    Q-value tolerance first); biases and accumulation stay f32 either way.
    """
    names = ("fc1", "fc2", "fc3", "out")
    dims = (STATES_NUM, *HIDDEN, ACTIONS_NUM)

    w1, b1 = params["fc1"]
    w1_p = jnp.zeros((STATES_NUM, LANE), dtype)
    w1_p = w1_p.at[:, :HIDDEN[0]].set(jnp.asarray(w1, dtype))

    w_stack = jnp.zeros((3, LANE, LANE), dtype)
    b_stack = jnp.zeros((4, 1, LANE), jnp.float32)
    b_stack = b_stack.at[0, 0, :HIDDEN[0]].set(jnp.asarray(b1, jnp.float32))
    for k, (name, d_in, d_out) in enumerate(zip(names[1:], dims[1:-1], dims[2:])):
        w, b = params[name]
        w_stack = w_stack.at[k, :d_in, :d_out].set(jnp.asarray(w, dtype))
        b_stack = b_stack.at[k + 1, 0, :d_out].set(jnp.asarray(b, jnp.float32))
    return w1_p, w_stack, b_stack


@jax.jit
def _forward_pallas(x, w1_p, w_stack, b_stack):
    b = x.shape[0]

    # Grid shaping: minimize step count (per-step overhead ~0.35us dominates a
    # 5-MFLOP MLP), but keep an even >=2-step parallel grid on v7x so both
    # TensorCores are used.  No batch padding: cdiv grid + Pallas partial-block
    # masking handle the remainder (compute is row-independent; OOB writes are
    # dropped and padded output rows never exist in out_shape).
    n_steps = _cdiv(b, MAX_TILE_B)
    if _NUM_TENSORCORES > 1 and b >= 2 * SUBLANE:
        n_steps = _round_up(max(n_steps, _NUM_TENSORCORES), _NUM_TENSORCORES)
    tile_b = _round_up(_cdiv(b, n_steps), SUBLANE)
    grid = (_cdiv(b, tile_b),)

    dims = (STATES_NUM, *HIDDEN, ACTIONS_NUM)
    flops = 2 * b * sum(i * o for i, o in zip(dims[:-1], dims[1:]))
    param_bytes = (w1_p.size * w1_p.dtype.itemsize
                   + w_stack.size * w_stack.dtype.itemsize
                   + b_stack.size * b_stack.dtype.itemsize)
    bytes_accessed = 4 * b * (STATES_NUM + LANE) + param_bytes
    cost = pl.CostEstimate(flops=flops, transcendentals=0,
                           bytes_accessed=bytes_accessed)

    out_p = pl.pallas_call(
        mlp_kernel,
        out_shape=jax.ShapeDtypeStruct((b, LANE), jnp.float32),
        grid=grid,
        in_specs=[
            pl.BlockSpec((tile_b, STATES_NUM), lambda i: (i, 0)),   # x: batch-tiled
            pl.BlockSpec(w1_p.shape, lambda i: (0, 0)),             # params resident in VMEM
            pl.BlockSpec(w_stack.shape, lambda i: (0, 0, 0)),
            pl.BlockSpec(b_stack.shape, lambda i: (0, 0, 0)),
        ],
        out_specs=pl.BlockSpec((tile_b, LANE), lambda i: (i, 0)),
        compiler_params=pltpu.CompilerParams(
            dimension_semantics=("parallel",),
            vmem_limit_bytes=32 * 1024 * 1024),
        cost_estimate=cost,
    )(x, w1_p, w_stack, b_stack)

    return out_p[:, :ACTIONS_NUM]


@jax.jit
def _forward_xla(x, w1_p, w_stack, b_stack):
    # Plain-XLA path for tiny action-selection batches where the pallas_call
    # fixed cost (launch + DMAs + slice) dominates.  Same math, same params.
    cdt = w1_p.dtype
    h = jnp.maximum(jnp.dot(x.astype(cdt), w1_p,
                            preferred_element_type=jnp.float32) + b_stack[0], 0.0)
    h = jnp.maximum(jnp.dot(h.astype(cdt), w_stack[0],
                            preferred_element_type=jnp.float32) + b_stack[1], 0.0)
    h = jnp.maximum(jnp.dot(h.astype(cdt), w_stack[1],
                            preferred_element_type=jnp.float32) + b_stack[2], 0.0)
    out = jnp.dot(h.astype(cdt), w_stack[2],
                  preferred_element_type=jnp.float32) + b_stack[3]
    return out[:, :ACTIONS_NUM]


def nnet_forward(x, prepared_params, *, use_pallas=None):
    """x: (B, STATES_NUM) float32. prepared_params: output of prepare_params().
    use_pallas: None -> auto (Pallas kernel for B > SMALL_BATCH_XLA_FALLBACK)."""
    x = jnp.asarray(x, jnp.float32)
    if use_pallas is None:
        use_pallas = x.shape[0] > SMALL_BATCH_XLA_FALLBACK
    fwd = _forward_pallas if use_pallas else _forward_xla
    return fwd(x, *prepared_params)


def init_params(key):
    """Deterministic init mirroring the module: weights ~ N(0, 0.05),
    biases ~ U(-1/sqrt(fan_in), 1/sqrt(fan_in)) (PyTorch Linear default)."""
    dims = [STATES_NUM, *HIDDEN, ACTIONS_NUM]
    names = ["fc1", "fc2", "fc3", "out"]
    params = {}
    for name, d_in, d_out in zip(names, dims[:-1], dims[1:]):
        key, kw, kb = jax.random.split(key, 3)
        w = 0.05 * jax.random.normal(kw, (d_in, d_out), dtype=jnp.float32)
        bound = 1.0 / (d_in ** 0.5)
        bias = jax.random.uniform(kb, (d_out,), minval=-bound, maxval=bound,
                                  dtype=jnp.float32)
        params[name] = (w, bias)
    return params


def nnet_reference(x, params):
    h = x
    for name in ["fc1", "fc2", "fc3"]:
        w, bias = params[name]
        h = jnp.maximum(h @ w + bias, 0.0)
    w, bias = params["out"]
    return h @ w + bias


if __name__ == "__main__":
    key = jax.random.PRNGKey(0)
    key, kx = jax.random.split(key)
    batch = 2
    x = jax.random.normal(kx, (batch, STATES_NUM), dtype=jnp.float32)

    params = init_params(key)
    prepared = prepare_params(params)   # one-time layout; reused every call

    # Small batch, Pallas path forced (exercises partial-block masking at B=2).
    out = jax.block_until_ready(nnet_forward(x, prepared, use_pallas=True))
    ref = nnet_reference(x, params)
    assert out.shape == (batch, ACTIONS_NUM), out.shape
    assert jnp.allclose(out, ref, atol=1e-5, rtol=1e-5), "mismatch vs reference (small)"

    # Small batch, default auto path (XLA fallback for B<=64) must match too.
    out_fb = jax.block_until_ready(nnet_forward(x, prepared))
    assert jnp.allclose(out_fb, ref, atol=1e-5, rtol=1e-5), "mismatch (XLA fallback)"

    # Larger, non-multiple-of-8 batch: multi-tile / partial-last-block path.
    key, kx2 = jax.random.split(key)
    x_big = jax.random.normal(kx2, (1037, STATES_NUM), dtype=jnp.float32)
    out_big = jax.block_until_ready(nnet_forward(x_big, prepared))
    ref_big = nnet_reference(x_big, params)
    assert out_big.shape == (1037, ACTIONS_NUM), out_big.shape
    assert jnp.allclose(out_big, ref_big, atol=1e-4, rtol=1e-4), "mismatch (big batch)"

    print("KERNEL_OK")
</pallas_src>

<mosaic_0001>
module attributes {stable_mosaic.version = 11 : i64} {
  func.func @mlp_kernel(%arg0: i32, %arg1: memref<8x11xf32, #tpu.memory_space<vmem>>, %arg2: memref<11x128xf32, #tpu.memory_space<vmem>>, %arg3: memref<3x128x128xf32, #tpu.memory_space<vmem>>, %arg4: memref<4x1x128xf32, #tpu.memory_space<vmem>>, %arg5: memref<8x128xf32, #tpu.memory_space<vmem>>) attributes {dimension_semantics = [#tpu.dimension_semantics<parallel>], iteration_bounds = array<i64: 1>, scalar_prefetch = 0 : i64, scratch_operands = 0 : i64, tpu.core_type = #tpu.core_type<tc>, window_params = [{transform_indices = @transform_0, window_bounds = array<i64: 8, 11>}, {pipeline_mode = #tpu.pipeline_mode<synchronous>, transform_indices = @transform_1, window_bounds = array<i64: 11, 128>}, {pipeline_mode = #tpu.pipeline_mode<synchronous>, transform_indices = @transform_2, window_bounds = array<i64: 3, 128, 128>}, {pipeline_mode = #tpu.pipeline_mode<synchronous>, transform_indices = @transform_3, window_bounds = array<i64: 4, 1, 128>}, {transform_indices = @transform_4, window_bounds = array<i64: 8, 128>}]} {
    %c0 = arith.constant 0 : index
    %c0_0 = arith.constant 0 : index
    %0 = vector.load %arg1[%c0, %c0_0] : memref<8x11xf32, #tpu.memory_space<vmem>>, vector<8x11xf32>
    %c0_1 = arith.constant 0 : index
    %c0_2 = arith.constant 0 : index
    %1 = vector.load %arg2[%c0_1, %c0_2] : memref<11x128xf32, #tpu.memory_space<vmem>>, vector<11x128xf32>
    %cst = arith.constant dense<0.000000e+00> : vector<8x128xf32>
    %2 = tpu.matmul %0, %1, %cst {dimension_numbers = #tpu.dot_dimension_numbers<[1], [0], [0], [1], [0, 0, 1, 1], [], []>} : vector<8x11xf32>, vector<11x128xf32>, vector<8x128xf32> -> vector<8x128xf32>
    %c0_3 = arith.constant 0 : index
    %c0_4 = arith.constant 0 : index
    %c0_5 = arith.constant 0 : index
    %3 = vector.load %arg4[%c0_3, %c0_4, %c0_5] : memref<4x1x128xf32, #tpu.memory_space<vmem>>, vector<1x1x128xf32>
    %4 = vector.shape_cast %3 : vector<1x1x128xf32> to vector<1x128xf32>
    %5 = vector.broadcast %4 : vector<1x128xf32> to vector<8x128xf32>
    %6 = arith.addf %2, %5 : vector<8x128xf32>
    %cst_6 = arith.constant 0.000000e+00 : f32
    %7 = vector.broadcast %cst_6 : f32 to vector<8x128xf32>
    %8 = arith.maximumf %6, %7 : vector<8x128xf32>
    %c0_7 = arith.constant 0 : index
    %c0_8 = arith.constant 0 : index
    %c0_9 = arith.constant 0 : index
    %9 = vector.load %arg3[%c0_7, %c0_8, %c0_9] : memref<3x128x128xf32, #tpu.memory_space<vmem>>, vector<1x128x128xf32>
    %10 = vector.shape_cast %9 : vector<1x128x128xf32> to vector<128x128xf32>
    %cst_10 = arith.constant dense<0.000000e+00> : vector<8x128xf32>
    %11 = tpu.matmul %8, %10, %cst_10 {dimension_numbers = #tpu.dot_dimension_numbers<[1], [0], [0], [1], [0, 0, 1, 1], [], []>} : vector<8x128xf32>, vector<128x128xf32>, vector<8x128xf32> -> vector<8x128xf32>
    %c1 = arith.constant 1 : index
    %c0_11 = arith.constant 0 : index
    %c0_12 = arith.constant 0 : index
    %12 = vector.load %arg4[%c1, %c0_11, %c0_12] : memref<4x1x128xf32, #tpu.memory_space<vmem>>, vector<1x1x128xf32>
    %13 = vector.shape_cast %12 : vector<1x1x128xf32> to vector<1x128xf32>
    %14 = vector.broadcast %13 : vector<1x128xf32> to vector<8x128xf32>
    %15 = arith.addf %11, %14 : vector<8x128xf32>
    %cst_13 = arith.constant 0.000000e+00 : f32
    %16 = vector.broadcast %cst_13 : f32 to vector<8x128xf32>
    %17 = arith.maximumf %15, %16 : vector<8x128xf32>
    %c1_14 = arith.constant 1 : index
    %c0_15 = arith.constant 0 : index
    %c0_16 = arith.constant 0 : index
    %18 = vector.load %arg3[%c1_14, %c0_15, %c0_16] : memref<3x128x128xf32, #tpu.memory_space<vmem>>, vector<1x128x128xf32>
    %19 = vector.shape_cast %18 : vector<1x128x128xf32> to vector<128x128xf32>
    %cst_17 = arith.constant dense<0.000000e+00> : vector<8x128xf32>
    %20 = tpu.matmul %17, %19, %cst_17 {dimension_numbers = #tpu.dot_dimension_numbers<[1], [0], [0], [1], [0, 0, 1, 1], [], []>} : vector<8x128xf32>, vector<128x128xf32>, vector<8x128xf32> -> vector<8x128xf32>
    %c2 = arith.constant 2 : index
    %c0_18 = arith.constant 0 : index
    %c0_19 = arith.constant 0 : index
    %21 = vector.load %arg4[%c2, %c0_18, %c0_19] : memref<4x1x128xf32, #tpu.memory_space<vmem>>, vector<1x1x128xf32>
    %22 = vector.shape_cast %21 : vector<1x1x128xf32> to vector<1x128xf32>
    %23 = vector.broadcast %22 : vector<1x128xf32> to vector<8x128xf32>
    %24 = arith.addf %20, %23 : vector<8x128xf32>
    %cst_20 = arith.constant 0.000000e+00 : f32
    %25 = vector.broadcast %cst_20 : f32 to vector<8x128xf32>
    %26 = arith.maximumf %24, %25 : vector<8x128xf32>
    %c2_21 = arith.constant 2 : index
    %c0_22 = arith.constant 0 : index
    %c0_23 = arith.constant 0 : index
    %27 = vector.load %arg3[%c2_21, %c0_22, %c0_23] : memref<3x128x128xf32, #tpu.memory_space<vmem>>, vector<1x128x128xf32>
    %28 = vector.shape_cast %27 : vector<1x128x128xf32> to vector<128x128xf32>
    %cst_24 = arith.constant dense<0.000000e+00> : vector<8x128xf32>
    %29 = tpu.matmul %26, %28, %cst_24 {dimension_numbers = #tpu.dot_dimension_numbers<[1], [0], [0], [1], [0, 0, 1, 1], [], []>} : vector<8x128xf32>, vector<128x128xf32>, vector<8x128xf32> -> vector<8x128xf32>
    %c3 = arith.constant 3 : index
    %c0_25 = arith.constant 0 : index
    %c0_26 = arith.constant 0 : index
    %30 = vector.load %arg4[%c3, %c0_25, %c0_26] : memref<4x1x128xf32, #tpu.memory_space<vmem>>, vector<1x1x128xf32>
    %31 = vector.shape_cast %30 : vector<1x1x128xf32> to vector<1x128xf32>
    %32 = vector.broadcast %31 : vector<1x128xf32> to vector<8x128xf32>
    %33 = arith.addf %29, %32 : vector<8x128xf32>
    %c0_27 = arith.constant 0 : index
    %c0_28 = arith.constant 0 : index
    %34 = vector.load %arg5[%c0_27, %c0_28] : memref<8x128xf32, #tpu.memory_space<vmem>>, vector<8x128xf32>
    tpu.vector_store %arg5[%c0_27, %c0_28], %33 {strides = array<i32>} : memref<8x128xf32, #tpu.memory_space<vmem>>, vector<8x128xf32>,
    return
  }
  func.func @transform_0(%arg0: i32) -> (i32, i32) {
    %c0_i32 = arith.constant 0 : i32
    %c0_i32_0 = arith.constant 0 : i32
    return %arg0, %c0_i32 : i32, i32
  }
  func.func @transform_1(%arg0: i32) -> (i32, i32) {
    %c0_i32 = arith.constant 0 : i32
    %c0_i32_0 = arith.constant 0 : i32
    %c0_i32_1 = arith.constant 0 : i32
    return %c0_i32, %c0_i32_0 : i32, i32
  }
  func.func @transform_2(%arg0: i32) -> (i32, i32, i32) {
    %c0_i32 = arith.constant 0 : i32
    %c0_i32_0 = arith.constant 0 : i32
    %c0_i32_1 = arith.constant 0 : i32
    %c0_i32_2 = arith.constant 0 : i32
    return %c0_i32, %c0_i32_0, %c0_i32_1 : i32, i32, i32
  }
  func.func @transform_3(%arg0: i32) -> (i32, i32, i32) {
    %c0_i32 = arith.constant 0 : i32
    %c0_i32_0 = arith.constant 0 : i32
    %c0_i32_1 = arith.constant 0 : i32
    %c0_i32_2 = arith.constant 0 : i32
    return %c0_i32, %c0_i32_0, %c0_i32_1 : i32, i32, i32
  }
  func.func @transform_4(%arg0: i32) -> (i32, i32) {
    %c0_i32 = arith.constant 0 : i32
    %c0_i32_0 = arith.constant 0 : i32
    return %arg0, %c0_i32 : i32, i32
  }
}

</mosaic_0001>

<bundles_post_ra>
// kernel: _forward_pallas.1
= control target key start
LH: loop header
LB: loop body
LE: loop exit
PB: predicated region body
PF: predicated region fallthrough
CT: control target
= control target key end

     0   :  { %9 = vsyncpa [#allocation3], 0  ;;  %s952_s0 = inlined_call_operand.hbm [shape: f32[2,11], index: 0, kind: input, shape index: {}]   ;;  %s953_s1 = inlined_call_operand.hbm [shape: f32[11,128], index: 1, kind: input, shape index: {}]   ;;  %s954_s2 = inlined_call_operand.hbm [shape: f32[3,128,128], index: 2, kind: input, shape index: {}]   ;;  %s955_s3 = inlined_call_operand.vmem [shape: f32[4,1,128], index: 3, kind: input, shape index: {}]   ;;  %s956_s4 = inlined_call_operand.hbm [shape: f32[2,128], index: 4, kind: output, shape index: {}]  }
   0x1   :  { %10 = vsyncpa [#allocation6], 0 }
   0x2   :  { %11 = vsyncpa [#allocation4], 0 }
   0x3   :  { %16 = vsyncadd [#allocation3], 96  ;;  %s810_s15 = smov [#allocation5]   ;;  %s716_s19 = scalar_lea.hbm %s953_s1, 256 }
   0x4   :  { %s29_s16 = sshll.u32 %s810_s15, 4  ;;  %p717_p0 = scmp.ne.s32.totalorder %s953_s1, %s716_s19  ;;  %s30_s16 = int_to_ptr.vmem [resolvable:$true] %s29_s16 }
   0x5   :  { %p720_p1 = scmp.lt.u32.totalorder %s716_s19, %s953_s1 }
   0x7   :  { %p722_p2 = pnand %p720_p1, %p717_p0 }
   0x9   :  { %725 = shalt.err (!%p722_p2)
}
   0xa   :  { %s726_s24 = scalar_lea.vmem %s30_s16, 256  ;;  %p731_p4 = scmp.lt.s32.totalorder %s30_s16, %s30_s16 }
   0xb   :  { %p727_p3 = scmp.ne.s32.totalorder %s30_s16, %s726_s24  ;;  %p732_p5 = scmp.lt.s32.totalorder %s726_s24, %s726_s24 }
   0xd   :  { %p733_p6 = por %p732_p5, %p731_p4 }
   0xf   :  { %p734_p7 = pnand %p733_p6, %p727_p3 }
  0x11   :  { %737 = shalt.err (!%p734_p7)
}
  0x12   :  { %s811_s25 = smov 128   ;;  %s812_s26 = smov 8  }
  0x13   :  { %35 = dma.hbm_to_vmem [thread:$0]  %s953_s1, 256, %s30_s16, [#allocation6], %s811_s25, %s811_s25, %s812_s26  }
  0x14   :  { %s813_s29 = smov [#allocation2]   ;;  %s738_s7 = scalar_lea.hbm %s952_s0, 32 }
  0x15   :  { %s17_s30 = sshll.u32 %s813_s29, 4  ;;  %p739_p8 = scmp.ne.s32.totalorder %s952_s0, %s738_s7  ;;  %s18_s30 = int_to_ptr.vmem [resolvable:$true] %s17_s30 }
  0x16   :  { %p742_p9 = scmp.lt.u32.totalorder %s738_s7, %s952_s0 }
  0x18   :  { %p744_p10 = pnand %p742_p9, %p739_p8 }
  0x1a   :  { %747 = shalt.err (!%p744_p10)
}
  0x1b   :  { %s748_s12 = scalar_lea.vmem %s18_s30, 32  ;;  %s752_s1 = scalar_lea.vmem %s18_s30, 128 }
  0x1c   :  { %p749_p11 = scmp.ne.s32.totalorder %s18_s30, %s748_s12  ;;  %p753_p12 = scmp.lt.s32.totalorder %s18_s30, %s18_s30 }
  0x1d   :  { %p754_p13 = scmp.lt.s32.totalorder %s752_s1, %s748_s12 }
  0x1f   :  { %p755_p0 = por %p754_p13, %p753_p12 }
  0x21   :  { %p756_p1 = pnand %p755_p0, %p749_p11 }
  0x23   :  { %759 = shalt.err (!%p756_p1)
}
  0x24   :  { %s814_s13 = smov 32   ;;  %s815_s14 = smov 2  }
  0x25   :  { %23 = dma.hbm_to_vmem [thread:$0]  %s952_s0, 32, %s18_s30, [#allocation3], %s814_s13, %s814_s13, %s815_s14  }
  0x26   :  { %s816_s17 = smov [#allocation7]   ;;  %s760_s21 = scalar_lea.hbm %s954_s2, 6144 }
  0x27   :  { %s41_s18 = sshll.u32 %s816_s17, 4  ;;  %p761_p2 = scmp.ne.s32.totalorder %s954_s2, %s760_s21  ;;  %s42_s18 = int_to_ptr.vmem [resolvable:$true] %s41_s18 }
  0x28   :  { %p764_p3 = scmp.lt.u32.totalorder %s760_s21, %s954_s2 }
  0x2a   :  { %p766_p4 = pnand %p764_p3, %p761_p2 }
  0x2c   :  { %769 = shalt.err (!%p766_p4)
}
  0x2d   :  { %s770_s28 = scalar_lea.vmem %s42_s18, 6144  ;;  %p775_p6 = scmp.lt.s32.totalorder %s42_s18, %s42_s18 }
  0x2e   :  { %p771_p5 = scmp.ne.s32.totalorder %s42_s18, %s770_s28  ;;  %p776_p7 = scmp.lt.s32.totalorder %s770_s28, %s770_s28 }
  0x30   :  { %p777_p8 = por %p776_p7, %p775_p6 }
  0x32   :  { %p778_p9 = pnand %p777_p8, %p771_p5 }
  0x34   :  { %781 = shalt.err (!%p778_p9)
}
  0x35   :  { %47 = dma.hbm_to_vmem [thread:$0]  %s954_s2, 6144, %s42_s18, [#allocation6], %s811_s25, %s811_s25, %s812_s26  }
  0x36   :  { %804 = dma.done.wait [#allocation3], 128  }
  0x37   :  { %805 = vsyncadd [#allocation3], 4294967168 }
  0x38   :  { %806 = dma.done.wait [#allocation6], 6400  }
  0x39   :  { %807 = vsyncadd [#allocation6], 4294960896  ;;  %v817_v0 = vmov 0.0|0.0   ;;  %vm818_vm0 = vmmov 0   ;;  %v819_v1 = vmov 0.0   ;;  %vm73_vm1 = vcmask 1042432  }
  0x3a   :  { %628 = vmatprep.subr.bf16.mxu0 %v817_v0  ;;  %632 = vmatprep.subr.bf16.mxu1 %v817_v0  ;;  %v60_v2 = vld [vmem:[#allocation5] sm:$0xff]  ;;  %v61_v3 = vld [vmem:[#allocation5 + $0x8] sm:$0x7]  ;;  %vm820_vm2 = vmmov 1   ;;  %v148_v5 = vld [vmem:[#allocation7] sm:$0xff]  ;;  %vm69_vm4 = vcmask 89088  }
  0x3b   :  { %520 = vmatprep.mubr.msk.f32.mxu0 %vm818_vm0, %v819_v1  ;;  %555 = vmatprep.mubr.msk.f32.mxu1 %vm818_vm0, %v819_v1  ;;  %vm630_vm3 = vmpackc.low %vm73_vm1, %vm820_vm2  ;;  %v629_v4 = vpack.c.bf16 %v61_v3, %v60_v2  ;;  %v149_v6 = vld [vmem:[#allocation7 + $0x8] sm:$0xff]  ;;  %v150_v7 = vld [vmem:[#allocation7 + $0x10] sm:$0xff] }
  0x3c   :  { %v633_v8 = vpack.c.bf16 %v149_v6, %v148_v5  ;;  %v151_v9 = vld [vmem:[#allocation7 + $0x18] sm:$0xff]  ;;  %v59_v10 = vld [vmem:[#allocation2] sm:$0xff]  ;;  %v152_v12 = vld [vmem:[#allocation7 + $0x20] sm:$0xff] }
  0x3d   :  { %631 = vmatpush3.bf16.msk.msra.mxu0 %vm630_vm3, %v629_v4  ;;  %v636_v11 = vpack.c.bf16 %v151_v9, %v150_v7  ;;  %v153_v13 = vld [vmem:[#allocation7 + $0x28] sm:$0xff]  ;;  %v154_v15 = vld [vmem:[#allocation7 + $0x30] sm:$0xff]  ;;  %v155_v16 = vld [vmem:[#allocation7 + $0x38] sm:$0xff] }
  0x3e   :  { %634 = vmatpush3.bf16.msra.mxu1 %v633_v8  ;;  %656 = vmatprep.subr.bf16.mxu0 %v817_v0  ;;  %v639_v14 = vpack.c.bf16 %v153_v13, %v152_v12  ;;  %v642_v17 = vpack.c.bf16 %v155_v16, %v154_v15  ;;  %v156_v18 = vld [vmem:[#allocation7 + $0x40] sm:$0xff]  ;;  %v157_v19 = vld [vmem:[#allocation7 + $0x48] sm:$0xff]  ;;  %v158_v21 = vld [vmem:[#allocation7 + $0x50] sm:$0xff] }
  0x3f   :  { %635 = vmatprep.subr.bf16.mxu1 %v817_v0  ;;  %v645_v20 = vpack.c.bf16 %v157_v19, %v156_v18  ;;  %v159_v22 = vld [vmem:[#allocation7 + $0x58] sm:$0xff]  ;;  %v160_v24 = vld [vmem:[#allocation7 + $0x60] sm:$0xff]  ;;  %v161_v25 = vld [vmem:[#allocation7 + $0x68] sm:$0xff] }
  0x40   :  { %521 = vmatmul.mubr.msk.f32.vlgmr.msra.gmra.mrb[0].mxu0 %vm69_vm4, %v59_v10  ;;  %v648_v23 = vpack.c.bf16 %v159_v22, %v158_v21  ;;  %v651_v26 = vpack.c.bf16 %v161_v25, %v160_v24  ;;  %v162_v27 = vld [vmem:[#allocation7 + $0x70] sm:$0xff]  ;;  %v163_v28 = vld [vmem:[#allocation7 + $0x78] sm:$0xff]  ;;  %v244_v30 = vld [vmem:[#allocation7 + $0x80] sm:$0xff] }
  0x41   :  { %590 = vmatprep.mubr.msk.f32.mxu0 %vm818_vm0, %v819_v1  ;;  %v654_v29 = vpack.c.bf16 %v163_v28, %v162_v27  ;;  %v245_v31 = vld [vmem:[#allocation7 + $0x88] sm:$0xff]  ;;  %v246_v32 = vld [vmem:[#allocation7 + $0x90] sm:$0xff]  ;;  %v247_v34 = vld [vmem:[#allocation7 + $0x98] sm:$0xff] }
  0x42   :  { %637 = vmatpush3.bf16.msra.mxu1 %v636_v11  ;;  %v657_v33 = vpack.c.bf16 %v245_v31, %v244_v30  ;;  %v660_v35 = vpack.c.bf16 %v247_v34, %v246_v32  ;;  %v248_v36 = vld [vmem:[#allocation7 + $0xa0] sm:$0xff]  ;;  %v249_v37 = vld [vmem:[#allocation7 + $0xa8] sm:$0xff]  ;;  %v250_v39 = vld [vmem:[#allocation7 + $0xb0] sm:$0xff] }
  0x43   :  { %638 = vmatprep.subr.bf16.mxu1 %v817_v0  ;;  %v663_v38 = vpack.c.bf16 %v249_v37, %v248_v36  ;;  %v251_v40 = vld [vmem:[#allocation7 + $0xb8] sm:$0xff]  ;;  %v252_v42 = vld [vmem:[#allocation7 + $0xc0] sm:$0xff]  ;;  %v253_v43 = vld [vmem:[#allocation7 + $0xc8] sm:$0xff] }
  0x44   :  { %658 = vmatpush3.bf16.msra.mxu0 %v657_v33  ;;  %v666_v41 = vpack.c.bf16 %v251_v40, %v250_v39  ;;  %v669_v44 = vpack.c.bf16 %v253_v43, %v252_v42  ;;  %v254_v45 = vld [vmem:[#allocation7 + $0xd0] sm:$0xff]  ;;  %v255_v46 = vld [vmem:[#allocation7 + $0xd8] sm:$0xff]  ;;  %v256_v48 = vld [vmem:[#allocation7 + $0xe0] sm:$0xff] }
  0x45   :  { %659 = vmatprep.subr.bf16.mxu0 %v817_v0  ;;  %v672_v47 = vpack.c.bf16 %v255_v46, %v254_v45  ;;  %v257_v49 = vld [vmem:[#allocation7 + $0xe8] sm:$0xff]  ;;  %v453_v51 = vld [vmem:[%s955_s3] ss:$0 sm:$0xff]  ;;  %v258_v56 = vld [vmem:[#allocation7 + $0xf0] sm:$0xff] }
  0x46   :  { %640 = vmatpush3.bf16.msra.mxu1 %v639_v14  ;;  %v675_v50 = vpack.c.bf16 %v257_v49, %v256_v48  ;;  %v259_v57 = vld [vmem:[#allocation7 + $0xf8] sm:$0xff]  ;;  %v340_v59 = vld [vmem:[#allocation7 + $0x100] sm:$0xff]  ;;  %v341_v60 = vld [vmem:[#allocation7 + $0x108] sm:$0xff] }
  0x47   :  { %641 = vmatprep.subr.bf16.mxu1 %v817_v0  ;;  %v678_v58 = vpack.c.bf16 %v259_v57, %v258_v56  ;;  %v342_v61 = vld [vmem:[#allocation7 + $0x110] sm:$0xff]  ;;  %v681_v62 = vpack.c.bf16 %v341_v60, %v340_v59  ;;  %v343_v63 = vld [vmem:[#allocation7 + $0x118] sm:$0xff]  ;;  %v344_v3 = vld [vmem:[#allocation7 + $0x120] sm:$0xff] }
  0x48   :  { %661 = vmatpush3.bf16.msra.mxu0 %v660_v35  ;;  %v684_v2 = vpack.c.bf16 %v343_v63, %v342_v61  ;;  %v345_v4 = vld [vmem:[#allocation7 + $0x128] sm:$0xff]  ;;  %v347_v6 = vld [vmem:[#allocation7 + $0x138] sm:$0xff]  ;;  %v348_v8 = vld [vmem:[#allocation7 + $0x140] sm:$0xff] }
  0x49   :  { %662 = vmatprep.subr.bf16.mxu0 %v817_v0  ;;  %v687_v5 = vpack.c.bf16 %v345_v4, %v344_v3  ;;  %v349_v9 = vld [vmem:[#allocation7 + $0x148] sm:$0xff]  ;;  %v350_v11 = vld [vmem:[#allocation7 + $0x150] sm:$0xff]  ;;  %v351_v12 = vld [vmem:[#allocation7 + $0x158] sm:$0xff] }
  0x4a   :  { %643 = vmatpush3.bf16.msra.mxu1 %v642_v17  ;;  %v693_v10 = vpack.c.bf16 %v349_v9, %v348_v8  ;;  %v696_v13 = vpack.c.bf16 %v351_v12, %v350_v11  ;;  %v352_v14 = vld [vmem:[#allocation7 + $0x160] sm:$0xff]  ;;  %v353_v15 = vld [vmem:[#allocation7 + $0x168] sm:$0xff]  ;;  %v354_v22 = vld [vmem:[#allocation7 + $0x170] sm:$0xff] }
  0x4b   :  { %644 = vmatprep.subr.bf16.mxu1 %v817_v0  ;;  %v699_v16 = vpack.c.bf16 %v353_v15, %v352_v14  ;;  %v457_v17 = vld [vmem:[%s955_s3 + $0x1] ss:$0 sm:$0xff]  ;;  %v459_v25 = vld [vmem:[%s955_s3 + $0x2] ss:$0 sm:$0xff] }
  0x4c   :  { %664 = vmatpush3.bf16.msra.mxu0 %v663_v38 }
  0x4d   :  { %665 = vmatprep.subr.bf16.mxu0 %v817_v0 }
  0x4e   :  { %646 = vmatpush3.bf16.msra.mxu1 %v645_v20 }
  0x4f   :  { %647 = vmatprep.subr.bf16.mxu1 %v817_v0 }
  0x50   :  { %667 = vmatpush3.bf16.msra.mxu0 %v666_v41 }
  0x51   :  { %668 = vmatprep.subr.bf16.mxu0 %v817_v0 }
  0x52   :  { %649 = vmatpush3.bf16.msra.mxu1 %v648_v23  ;;  %v355_v23 = vld [vmem:[#allocation7 + $0x178] sm:$0xff] }
  0x53   :  { %650 = vmatprep.subr.bf16.mxu1 %v817_v0  ;;  %v702_v24 = vpack.c.bf16 %v355_v23, %v354_v22 }
  0x54   :  { %670 = vmatpush3.bf16.msra.mxu0 %v669_v44 }
  0x55   :  { %671 = vmatprep.subr.bf16.mxu0 %v817_v0 }
  0x56   :  { %652 = vmatpush3.bf16.msra.mxu1 %v651_v26 }
  0x57   :  { %653 = vmatprep.subr.bf16.mxu1 %v817_v0 }
  0x58   :  { %673 = vmatpush3.bf16.msra.mxu0 %v672_v47 }
  0x59   :  { %674 = vmatprep.subr.bf16.mxu0 %v817_v0 }
  0x5a   :  { %655 = vmatpush3.bf16.msra.mxu1 %v654_v29  ;;  %v461_v29 = vld [vmem:[%s955_s3 + $0x3] ss:$0 sm:$0xff] }
  0x5b   :  { %680 = vmatprep.subr.bf16.mxu1 %v817_v0 }
  0x5c   :  { %676 = vmatpush3.bf16.msra.mxu0 %v675_v50 }
  0x5d   :  { %677 = vmatprep.subr.bf16.mxu0 %v817_v0 }
  0x60   :  { %679 = vmatpush3.bf16.msra.mxu0 %v678_v58 }
 0x113   :  { %v143_v52 = vpop.f32.mrb[0].mxu0 }
 0x114   :  { %v144_v53 = vadd.f32 %v453_v51, %v143_v52  ;;  %v522_v54 = vpop.f32.mrb[1].mxu0 }
 0x116   :  { %v147_v55 = vmax.f32 %v144_v53, 0.0 }
 0x118   :  { %556 = vmatmul.mubr.f32.vlgmr.msra.gmra.mrb[0].mxu1 %v147_v55 }
 0x119   :  { %625 = vmatprep.mubr.msk.f32.mxu1 %vm818_vm0, %v819_v1  ;;  %682 = vmatpush3.bf16.msra.mxu1 %v681_v62  ;;  %v346_v1 = vld [vmem:[#allocation7 + $0x130] sm:$0xff] }
 0x11a   :  { %683 = vmatprep.subr.bf16.mxu1 %v817_v0  ;;  %v690_v7 = vpack.c.bf16 %v347_v6, %v346_v1 }
 0x11d   :  { %685 = vmatpush3.bf16.msra.mxu1 %v684_v2 }
 0x11e   :  { %686 = vmatprep.subr.bf16.mxu1 %v817_v0 }
 0x121   :  { %688 = vmatpush3.bf16.msra.mxu1 %v687_v5 }
 0x122   :  { %689 = vmatprep.subr.bf16.mxu1 %v817_v0 }
 0x125   :  { %691 = vmatpush3.bf16.msra.mxu1 %v690_v7 }
 0x126   :  { %692 = vmatprep.subr.bf16.mxu1 %v817_v0 }
 0x129   :  { %694 = vmatpush3.bf16.msra.mxu1 %v693_v10 }
 0x12a   :  { %695 = vmatprep.subr.bf16.mxu1 %v817_v0 }
 0x12d   :  { %697 = vmatpush3.bf16.msra.mxu1 %v696_v13 }
 0x12e   :  { %698 = vmatprep.subr.bf16.mxu1 %v817_v0 }
 0x131   :  { %700 = vmatpush3.bf16.msra.mxu1 %v699_v16 }
 0x132   :  { %701 = vmatprep.subr.bf16.mxu1 %v817_v0 }
 0x135   :  { %703 = vmatpush3.bf16.msra.mxu1 %v702_v24 }
 0x1eb   :  { %v238_v18 = vpop.f32.mrb[0].mxu1 }
 0x1ec   :  { %v239_v19 = vadd.f32 %v457_v17, %v238_v18  ;;  %v557_v20 = vpop.f32.mrb[1].mxu1 }
 0x1ee   :  { %v242_v21 = vmax.f32 %v239_v19, 0.0 }
 0x1f0   :  { %591 = vmatmul.mubr.f32.vlgmr.msra.gmra.mrb[2].mxu0 %v242_v21 }
 0x2c3   :  { %v334_v26 = vpop.f32.mrb[2].mxu0 }
 0x2c4   :  { %v335_v27 = vadd.f32 %v459_v25, %v334_v26  ;;  %v592_v0 = vpop.f32.mrb[3].mxu0 }
 0x2c6   :  { %v338_v28 = vmax.f32 %v335_v27, 0.0 }
 0x2c8   :  { %626 = vmatmul.mubr.f32.vlgmr.msra.gmra.mrb[2].mxu1 %v338_v28 }
 0x39b   :  { %v430_v30 = vpop.f32.mrb[2].mxu1 }
 0x39c   :  { %v431_v31 = vadd.f32 %v461_v29, %v430_v30  ;;  %v627_v32 = vpop.f32.mrb[3].mxu1 }
 0x39e   :  { %434 = vst [vmem:[#allocation8] sm:$0xff] %v431_v31 }
 0x39f   :  { %439 = vsyncadd [#allocation4], 96  ;;  %s821_s9 = smov [#allocation8]  }
 0x3a0   :  { %s440_s10 = sshll.u32 %s821_s9, 4  ;;  %s441_s10 = int_to_ptr.vmem [resolvable:$true] %s440_s10 }
 0x3a1   :  { %s782_s11 = scalar_lea.vmem %s441_s10, 32  ;;  %s786_s12 = scalar_lea.vmem %s441_s10, 128 }
 0x3a2   :  { %p783_p10 = scmp.ne.s32.totalorder %s441_s10, %s782_s11  ;;  %p787_p11 = scmp.lt.s32.totalorder %s441_s10, %s441_s10 }
 0x3a3   :  { %p788_p12 = scmp.lt.s32.totalorder %s786_s12, %s782_s11 }
 0x3a5   :  { %p789_p13 = por %p788_p12, %p787_p11 }
 0x3a7   :  { %p790_p0 = pnand %p789_p13, %p783_p10 }
 0x3a9   :  { %793 = shalt.err (!%p790_p0)
}
 0x3aa   :  { %s794_s3 = scalar_lea.hbm %s956_s4, 32 }
 0x3ab   :  { %p795_p1 = scmp.ne.s32.totalorder %s956_s4, %s794_s3  ;;  %p798_p2 = scmp.lt.u32.totalorder %s794_s3, %s956_s4 }
 0x3ad   :  { %p800_p3 = pnand %p798_p2, %p795_p1 }
 0x3af   :  { %803 = shalt.err (!%p800_p3)
}
 0x3b0   :  { %446 = dma.vmem_to_hbm [thread:$0]  %s441_s10, 32, %s956_s4, [#allocation4], %s814_s13, %s814_s13, %s815_s14  }
 0x3b1   :  { %808 = dma.done.wait [#allocation4], 128  }
 0x3b2   :  { %809 = vsyncadd [#allocation4], 4294967168 }
 0x3b3   :  { %450 = vsyncpa [#allocation3], 1 }
 0x3b4   :  { %451 = vsyncpa [#allocation6], 1 }
 0x3b5   :  { %452 = vsyncpa [#allocation4], 1 }

</bundles_post_ra>
